<compile_context>
chip_gen: v7x
topology: tpu7x:2x2x1
jax: 0.10.0
libtpu: 0.0.40
codegen_flags: <defaults>
</compile_context>

<pallas_src>
import functools

import jax
import jax.numpy as jnp
from jax.experimental import pallas as pl
from jax.experimental.pallas import tpu as pltpu

SUBLANE = 8            # f32/bf16 sublane quantum for row tiling
MAX_TILE_ROWS = 2048   # large row tile; per-step VMEM here is only ~100 KiB


def _round_up(x, m):
    return (x + m - 1) // m * m


def _cdiv(a, b):
    return (a + b - 1) // b


def _softplus(x):
    # matches torch.nn.functional.softplus (beta=1, threshold=20)
    return jnp.where(x > 20.0, x, jnp.log1p(jnp.exp(jnp.minimum(x, 20.0))))


def _mlp_kernel(x_ref,
                w1_ref, b1_ref,
                w2_ref, b2_ref,
                w3_ref, b3_ref,
                w4_ref, b4_ref,
                mean_ref, std_ref, *, output_dim):
    """Fused 4-layer MLP on one row tile. bf16 operands, f32 accumulation.
    Softplus (EUP) is applied only to the std columns of the final layer."""
    x = x_ref[...]

    h = jnp.dot(x, w1_ref[...], preferred_element_type=jnp.float32) + b1_ref[...]
    h = jnp.maximum(h, 0.0).astype(w2_ref.dtype)

    h = jnp.dot(h, w2_ref[...], preferred_element_type=jnp.float32) + b2_ref[...]
    h = jnp.maximum(h, 0.0).astype(w3_ref.dtype)

    h = jnp.dot(h, w3_ref[...], preferred_element_type=jnp.float32) + b3_ref[...]
    h = jnp.maximum(h, 0.0).astype(w4_ref.dtype)

    y = jnp.dot(h, w4_ref[...], preferred_element_type=jnp.float32) + b4_ref[...]

    mean_ref[...] = y[:, :output_dim].astype(mean_ref.dtype)
    std_ref[...] = _softplus(y[:, output_dim:]).astype(std_ref.dtype)


def neural_network_forward(x_context, params, output_dim, *,
                           max_tile_rows=MAX_TILE_ROWS):
    """x_context: (batch, num_context, input_dim) float32.
    Returns (mean, std), each (batch, num_context, output_dim) float32."""
    b, n, d_in = x_context.shape
    rows = b * n

    (w1, b1), (w2, b2), (w3, b3), (w4, b4) = params
    latent_dim = w1.shape[1]
    out2 = w4.shape[1]  # 2 * output_dim
    assert out2 == 2 * output_dim

    # ---- row tiling: minimize padding, keep >=2 grid steps for v7x megacore ----
    n_tiles = max(_cdiv(rows, max_tile_rows), 2)
    tile_rows = _round_up(_cdiv(rows, n_tiles), SUBLANE)
    rows_p = _round_up(rows, tile_rows)
    grid = (rows_p // tile_rows,)

    # ---- operands: bf16 x / weights, f32 biases; pad rows only (exact) ----
    x_flat = x_context.reshape(rows, d_in).astype(jnp.bfloat16)
    if rows_p == rows:
        x_pad = x_flat
    else:
        x_pad = jnp.zeros((rows_p, d_in), jnp.bfloat16).at[:rows].set(x_flat)

    def cast_w(w):
        return w.astype(jnp.bfloat16)

    def cast_b(bvec):
        return bvec.reshape(1, -1).astype(jnp.float32)

    w1c, b1c = cast_w(w1), cast_b(b1)
    w2c, b2c = cast_w(w2), cast_b(b2)
    w3c, b3c = cast_w(w3), cast_b(b3)
    w4c, b4c = cast_w(w4), cast_b(b4)

    # ---- specs: x/outputs tiled over rows, weights/biases VMEM-resident ----
    const = lambda i: (0, 0)
    x_spec = pl.BlockSpec((tile_rows, d_in), lambda i: (i, 0))
    in_specs = [
        x_spec,
        pl.BlockSpec((d_in, latent_dim), const), pl.BlockSpec((1, latent_dim), const),
        pl.BlockSpec((latent_dim, latent_dim), const), pl.BlockSpec((1, latent_dim), const),
        pl.BlockSpec((latent_dim, latent_dim), const), pl.BlockSpec((1, latent_dim), const),
        pl.BlockSpec((latent_dim, out2), const), pl.BlockSpec((1, out2), const),
    ]
    out_specs = [
        pl.BlockSpec((tile_rows, output_dim), lambda i: (i, 0)),
        pl.BlockSpec((tile_rows, output_dim), lambda i: (i, 0)),
    ]
    out_shape = [
        jax.ShapeDtypeStruct((rows_p, output_dim), jnp.float32),
        jax.ShapeDtypeStruct((rows_p, output_dim), jnp.float32),
    ]

    # ---- honest cost estimate (unpadded feature dims, bf16 operand bytes) ----
    flops = 2 * rows_p * (d_in * latent_dim
                          + 2 * latent_dim * latent_dim
                          + latent_dim * out2)
    transcendentals = 2 * rows_p * output_dim  # exp + log1p per softplus element
    bytes_accessed = (
        2 * rows_p * d_in                                             # x (bf16)
        + 2 * (d_in * latent_dim + 2 * latent_dim * latent_dim
               + latent_dim * out2)                                   # weights (bf16)
        + 4 * (3 * latent_dim + out2)                                 # biases (f32)
        + 4 * 2 * rows_p * output_dim                                 # mean + std (f32)
    )

    mean_p, std_p = pl.pallas_call(
        functools.partial(_mlp_kernel, output_dim=output_dim),
        out_shape=out_shape,
        grid=grid,
        in_specs=in_specs,
        out_specs=out_specs,
        compiler_params=pltpu.CompilerParams(
            dimension_semantics=("parallel",),   # shard row tiles across TCs on v7x
            vmem_limit_bytes=32 << 20,
        ),
        cost_estimate=pl.CostEstimate(
            flops=flops,
            transcendentals=transcendentals,
            bytes_accessed=bytes_accessed,
        ),
    )(x_pad, w1c, b1c, w2c, b2c, w3c, b3c, w4c, b4c)

    mean = mean_p[:rows].reshape(b, n, output_dim)
    std = std_p[:rows].reshape(b, n, output_dim)
    return mean, std


def init_params(key, input_dim, latent_dim, output_dim):
    """Deterministic init of the 4 Linear layers (weights stored transposed:
    (in_features, out_features)) mimicking torch's uniform(-1/sqrt(fan_in))."""
    dims = [(input_dim, latent_dim),
            (latent_dim, latent_dim),
            (latent_dim, latent_dim),
            (latent_dim, 2 * output_dim)]
    params = []
    for i, (din, dout) in enumerate(dims):
        kw, kb = jax.random.split(jax.random.fold_in(key, i))
        scale = 1.0 / jnp.sqrt(jnp.float32(din))
        w = jax.random.uniform(kw, (din, dout), jnp.float32, -scale, scale)
        bias = jax.random.uniform(kb, (dout,), jnp.float32, -scale, scale)
        params.append((w, bias))
    return params


def reference_forward(x_context, params, output_dim):
    """Pure-JAX f32 reference for sanity checking."""
    h = x_context
    for i, (w, bvec) in enumerate(params):
        h = h @ w + bvec
        if i < len(params) - 1:
            h = jnp.maximum(h, 0.0)
    mean = h[..., :output_dim]
    std = _softplus(h[..., output_dim:])
    return mean, std


if __name__ == "__main__":
    batch, num_context = 2, 8
    input_dim, latent_dim, output_dim = 4, 32, 4

    key = jax.random.PRNGKey(0)
    k_x, k_p = jax.random.split(key)

    x_context = jax.random.normal(k_x, (batch, num_context, input_dim), jnp.float32)
    params = init_params(k_p, input_dim, latent_dim, output_dim)

    mean, std = neural_network_forward(x_context, params, output_dim)
    jax.block_until_ready((mean, std))

    ref_mean, ref_std = reference_forward(x_context, params, output_dim)
    assert mean.shape == (batch, num_context, output_dim)
    assert std.shape == (batch, num_context, output_dim)
    # bf16 operands -> loosened tolerance vs the f32 reference.
    assert jnp.allclose(mean, ref_mean, atol=5e-2, rtol=5e-2)
    assert jnp.allclose(std, ref_std, atol=5e-2, rtol=5e-2)
    assert bool(jnp.all(std > 0.0))

    print("KERNEL_OK")
</pallas_src>

<mosaic_0001>
module attributes {stable_mosaic.version = 11 : i64} {
  func.func @_mlp_kernel(%arg0: i32, %arg1: memref<8x4xbf16, #tpu.memory_space<vmem>>, %arg2: memref<4x32xbf16, #tpu.memory_space<vmem>>, %arg3: memref<1x32xf32, #tpu.memory_space<vmem>>, %arg4: memref<32x32xbf16, #tpu.memory_space<vmem>>, %arg5: memref<1x32xf32, #tpu.memory_space<vmem>>, %arg6: memref<32x32xbf16, #tpu.memory_space<vmem>>, %arg7: memref<1x32xf32, #tpu.memory_space<vmem>>, %arg8: memref<32x8xbf16, #tpu.memory_space<vmem>>, %arg9: memref<1x8xf32, #tpu.memory_space<vmem>>, %arg10: memref<8x4xf32, #tpu.memory_space<vmem>>, %arg11: memref<8x4xf32, #tpu.memory_space<vmem>>) attributes {dimension_semantics = [#tpu.dimension_semantics<parallel>], iteration_bounds = array<i64: 2>, scalar_prefetch = 0 : i64, scratch_operands = 0 : i64, tpu.core_type = #tpu.core_type<tc>, window_params = [{transform_indices = @transform_0, window_bounds = array<i64: 8, 4>}, {pipeline_mode = #tpu.pipeline_mode<synchronous>, transform_indices = @transform_1, window_bounds = array<i64: 4, 32>}, {pipeline_mode = #tpu.pipeline_mode<synchronous>, transform_indices = @transform_2, window_bounds = array<i64: 1, 32>}, {pipeline_mode = #tpu.pipeline_mode<synchronous>, transform_indices = @transform_3, window_bounds = array<i64: 32, 32>}, {pipeline_mode = #tpu.pipeline_mode<synchronous>, transform_indices = @transform_4, window_bounds = array<i64: 1, 32>}, {pipeline_mode = #tpu.pipeline_mode<synchronous>, transform_indices = @transform_5, window_bounds = array<i64: 32, 32>}, {pipeline_mode = #tpu.pipeline_mode<synchronous>, transform_indices = @transform_6, window_bounds = array<i64: 1, 32>}, {pipeline_mode = #tpu.pipeline_mode<synchronous>, transform_indices = @transform_7, window_bounds = array<i64: 32, 8>}, {pipeline_mode = #tpu.pipeline_mode<synchronous>, transform_indices = @transform_8, window_bounds = array<i64: 1, 8>}, {transform_indices = @transform_9, window_bounds = array<i64: 8, 4>}, {transform_indices = @transform_10, window_bounds = array<i64: 8, 4>}]} {
    %c0 = arith.constant 0 : index
    %c0_0 = arith.constant 0 : index
    %0 = vector.load %arg1[%c0, %c0_0] : memref<8x4xbf16, #tpu.memory_space<vmem>>, vector<8x4xbf16>
    %c0_1 = arith.constant 0 : index
    %c0_2 = arith.constant 0 : index
    %1 = vector.load %arg2[%c0_1, %c0_2] : memref<4x32xbf16, #tpu.memory_space<vmem>>, vector<4x32xbf16>
    %cst = arith.constant dense<0.000000e+00> : vector<8x32xf32>
    %2 = tpu.matmul %0, %1, %cst {dimension_numbers = #tpu.dot_dimension_numbers<[1], [0], [0], [1], [0, 0, 1, 1], [], []>} : vector<8x4xbf16>, vector<4x32xbf16>, vector<8x32xf32> -> vector<8x32xf32>
    %c0_3 = arith.constant 0 : index
    %c0_4 = arith.constant 0 : index
    %3 = vector.load %arg3[%c0_3, %c0_4] : memref<1x32xf32, #tpu.memory_space<vmem>>, vector<1x32xf32>
    %4 = vector.broadcast %3 : vector<1x32xf32> to vector<8x32xf32>
    %5 = arith.addf %2, %4 : vector<8x32xf32>
    %cst_5 = arith.constant 0.000000e+00 : f32
    %6 = vector.broadcast %cst_5 : f32 to vector<8x32xf32>
    %7 = arith.maximumf %5, %6 : vector<8x32xf32>
    %8 = arith.truncf %7 : vector<8x32xf32> to vector<8x32xbf16>
    %c0_6 = arith.constant 0 : index
    %c0_7 = arith.constant 0 : index
    %9 = vector.load %arg4[%c0_6, %c0_7] : memref<32x32xbf16, #tpu.memory_space<vmem>>, vector<32x32xbf16>
    %cst_8 = arith.constant dense<0.000000e+00> : vector<8x32xf32>
    %10 = tpu.matmul %8, %9, %cst_8 {dimension_numbers = #tpu.dot_dimension_numbers<[1], [0], [0], [1], [0, 0, 1, 1], [], []>} : vector<8x32xbf16>, vector<32x32xbf16>, vector<8x32xf32> -> vector<8x32xf32>
    %c0_9 = arith.constant 0 : index
    %c0_10 = arith.constant 0 : index
    %11 = vector.load %arg5[%c0_9, %c0_10] : memref<1x32xf32, #tpu.memory_space<vmem>>, vector<1x32xf32>
    %12 = vector.broadcast %11 : vector<1x32xf32> to vector<8x32xf32>
    %13 = arith.addf %10, %12 : vector<8x32xf32>
    %cst_11 = arith.constant 0.000000e+00 : f32
    %14 = vector.broadcast %cst_11 : f32 to vector<8x32xf32>
    %15 = arith.maximumf %13, %14 : vector<8x32xf32>
    %16 = arith.truncf %15 : vector<8x32xf32> to vector<8x32xbf16>
    %c0_12 = arith.constant 0 : index
    %c0_13 = arith.constant 0 : index
    %17 = vector.load %arg6[%c0_12, %c0_13] : memref<32x32xbf16, #tpu.memory_space<vmem>>, vector<32x32xbf16>
    %cst_14 = arith.constant dense<0.000000e+00> : vector<8x32xf32>
    %18 = tpu.matmul %16, %17, %cst_14 {dimension_numbers = #tpu.dot_dimension_numbers<[1], [0], [0], [1], [0, 0, 1, 1], [], []>} : vector<8x32xbf16>, vector<32x32xbf16>, vector<8x32xf32> -> vector<8x32xf32>
    %c0_15 = arith.constant 0 : index
    %c0_16 = arith.constant 0 : index
    %19 = vector.load %arg7[%c0_15, %c0_16] : memref<1x32xf32, #tpu.memory_space<vmem>>, vector<1x32xf32>
    %20 = vector.broadcast %19 : vector<1x32xf32> to vector<8x32xf32>
    %21 = arith.addf %18, %20 : vector<8x32xf32>
    %cst_17 = arith.constant 0.000000e+00 : f32
    %22 = vector.broadcast %cst_17 : f32 to vector<8x32xf32>
    %23 = arith.maximumf %21, %22 : vector<8x32xf32>
    %24 = arith.truncf %23 : vector<8x32xf32> to vector<8x32xbf16>
    %c0_18 = arith.constant 0 : index
    %c0_19 = arith.constant 0 : index
    %25 = vector.load %arg8[%c0_18, %c0_19] : memref<32x8xbf16, #tpu.memory_space<vmem>>, vector<32x8xbf16>
    %cst_20 = arith.constant dense<0.000000e+00> : vector<8x8xf32>
    %26 = tpu.matmul %24, %25, %cst_20 {dimension_numbers = #tpu.dot_dimension_numbers<[1], [0], [0], [1], [0, 0, 1, 1], [], []>} : vector<8x32xbf16>, vector<32x8xbf16>, vector<8x8xf32> -> vector<8x8xf32>
    %c0_21 = arith.constant 0 : index
    %c0_22 = arith.constant 0 : index
    %27 = vector.load %arg9[%c0_21, %c0_22] : memref<1x8xf32, #tpu.memory_space<vmem>>, vector<1x8xf32>
    %28 = vector.broadcast %27 : vector<1x8xf32> to vector<8x8xf32>
    %29 = arith.addf %26, %28 : vector<8x8xf32>
    %30 = vector.extract_strided_slice %29 {offsets = [0, 0], sizes = [8, 4], strides = [1, 1]} : vector<8x8xf32> to vector<8x4xf32>
    %c0_23 = arith.constant 0 : index
    %c0_24 = arith.constant 0 : index
    %31 = vector.load %arg10[%c0_23, %c0_24] : memref<8x4xf32, #tpu.memory_space<vmem>>, vector<8x4xf32>
    tpu.vector_store %arg10[%c0_23, %c0_24], %30 {strides = array<i32>} : memref<8x4xf32, #tpu.memory_space<vmem>>, vector<8x4xf32>,
    %32 = vector.extract_strided_slice %29 {offsets = [0, 4], sizes = [8, 4], strides = [1, 1]} : vector<8x8xf32> to vector<8x4xf32>
    %cst_25 = arith.constant 2.000000e+01 : f32
    %33 = vector.broadcast %cst_25 : f32 to vector<8x4xf32>
    %34 = arith.cmpf ogt, %32, %33 : vector<8x4xf32>
    %cst_26 = arith.constant 2.000000e+01 : f32
    %35 = vector.broadcast %cst_26 : f32 to vector<8x4xf32>
    %36 = arith.minimumf %32, %35 : vector<8x4xf32>
    %37 = math.exp %36 : vector<8x4xf32>
    %38 = math.log1p %37 : vector<8x4xf32>
    %39 = arith.select %34, %32, %38 : vector<8x4xi1>, vector<8x4xf32>
    %c0_27 = arith.constant 0 : index
    %c0_28 = arith.constant 0 : index
    %40 = vector.load %arg11[%c0_27, %c0_28] : memref<8x4xf32, #tpu.memory_space<vmem>>, vector<8x4xf32>
    tpu.vector_store %arg11[%c0_27, %c0_28], %39 {strides = array<i32>} : memref<8x4xf32, #tpu.memory_space<vmem>>, vector<8x4xf32>,
    return
  }
  func.func @transform_0(%arg0: i32) -> (i32, i32) {
    %c0_i32 = arith.constant 0 : i32
    %c0_i32_0 = arith.constant 0 : i32
    return %arg0, %c0_i32 : i32, i32
  }
  func.func @transform_1(%arg0: i32) -> (i32, i32) {
    %c0_i32 = arith.constant 0 : i32
    %c0_i32_0 = arith.constant 0 : i32
    %c0_i32_1 = arith.constant 0 : i32
    return %c0_i32, %c0_i32_0 : i32, i32
  }
  func.func @transform_2(%arg0: i32) -> (i32, i32) {
    %c0_i32 = arith.constant 0 : i32
    %c0_i32_0 = arith.constant 0 : i32
    %c0_i32_1 = arith.constant 0 : i32
    return %c0_i32, %c0_i32_0 : i32, i32
  }
  func.func @transform_3(%arg0: i32) -> (i32, i32) {
    %c0_i32 = arith.constant 0 : i32
    %c0_i32_0 = arith.constant 0 : i32
    %c0_i32_1 = arith.constant 0 : i32
    return %c0_i32, %c0_i32_0 : i32, i32
  }
  func.func @transform_4(%arg0: i32) -> (i32, i32) {
    %c0_i32 = arith.constant 0 : i32
    %c0_i32_0 = arith.constant 0 : i32
    %c0_i32_1 = arith.constant 0 : i32
    return %c0_i32, %c0_i32_0 : i32, i32
  }
  func.func @transform_5(%arg0: i32) -> (i32, i32) {
    %c0_i32 = arith.constant 0 : i32
    %c0_i32_0 = arith.constant 0 : i32
    %c0_i32_1 = arith.constant 0 : i32
    return %c0_i32, %c0_i32_0 : i32, i32
  }
  func.func @transform_6(%arg0: i32) -> (i32, i32) {
    %c0_i32 = arith.constant 0 : i32
    %c0_i32_0 = arith.constant 0 : i32
    %c0_i32_1 = arith.constant 0 : i32
    return %c0_i32, %c0_i32_0 : i32, i32
  }
  func.func @transform_7(%arg0: i32) -> (i32, i32) {
    %c0_i32 = arith.constant 0 : i32
    %c0_i32_0 = arith.constant 0 : i32
    %c0_i32_1 = arith.constant 0 : i32
    return %c0_i32, %c0_i32_0 : i32, i32
  }
  func.func @transform_8(%arg0: i32) -> (i32, i32) {
    %c0_i32 = arith.constant 0 : i32
    %c0_i32_0 = arith.constant 0 : i32
    %c0_i32_1 = arith.constant 0 : i32
    return %c0_i32, %c0_i32_0 : i32, i32
  }
  func.func @transform_9(%arg0: i32) -> (i32, i32) {
    %c0_i32 = arith.constant 0 : i32
    %c0_i32_0 = arith.constant 0 : i32
    return %arg0, %c0_i32 : i32, i32
  }
  func.func @transform_10(%arg0: i32) -> (i32, i32) {
    %c0_i32 = arith.constant 0 : i32
    %c0_i32_0 = arith.constant 0 : i32
    return %arg0, %c0_i32 : i32, i32
  }
}

</mosaic_0001>

<bundles_post_ra>
// kernel: tpu_custom_call.1
= control target key start
LH: loop header
LB: loop body
LE: loop exit
PB: predicated region body
PF: predicated region fallthrough
CT: control target
= control target key end

     0   :  { %16 = vsyncpa [#allocation3], 0  ;;  %s956_s13 = smov 0   ;;  %s1059_s0 = inlined_call_operand.vmem [shape: bf16[16,4], index: 0, kind: input, shape index: {}]   ;;  %s1060_s1 = inlined_call_operand.hbm [shape: bf16[4,32], index: 1, kind: input, shape index: {}]   ;;  %s1061_s2 = inlined_call_operand.vmem [shape: f32[1,32], index: 2, kind: input, shape index: {}]   ;;  %s1062_s3 = inlined_call_operand.vmem [shape: bf16[32,32], index: 3, kind: input, shape index: {}]   ;;  %s1063_s4 = inlined_call_operand.vmem [shape: f32[1,32], index: 4, kind: input, shape index: {}]   ;;  %s1064_s5 = inlined_call_operand.vmem [shape: bf16[32,32], index: 5, kind: input, shape index: {}]   ;;  %s1065_s6 = inlined_call_operand.vmem [shape: f32[1,32], index: 6, kind: input, shape index: {}]   ;;  %s1066_s7 = inlined_call_operand.vmem [shape: bf16[32,8], index: 7, kind: input, shape index: {}]   ;;  %s1067_s8 = inlined_call_operand.vmem [shape: f32[1,8], index: 8, kind: input, shape index: {}]   ;;  %s1068_s9 = inlined_call_operand.vmem [shape: f32[16,4], index: 9, kind: output, shape index: {0}]   ;;  %s1069_s10 = inlined_call_operand.vmem [shape: f32[16,4], index: 10, kind: output, shape index: {1}]  }
   0x1 LB: > { %s962_s14 = sadd.s32 4294967295, %s895_s13   ;;  %p760_p0 = scmp.ge.s32.totalorder %s895_s13, 1  ;;  %s895_s13 = sphi %s956_s13, %s22_s13  }
   0x2   : > { %p273_p1 = scmp.lt.s32.totalorder %s895_s13, 3  ;;  %p1070_p3 = scmp.eq.s32.totalorder %s962_s14, 0 }
   0x3   : > { %s897_s16 = smov [#allocation2]   ;;  %s857_s21 = scalar_lea.hbm %s1060_s1, 32 }
   0x4   : > { %p966_p2 = pnand %p760_p0, %p273_p1  ;;  %s286_s17 = sshll.u32 %s897_s16, 4  ;;  %s287_s17 = int_to_ptr.vmem [resolvable:$true] %s286_s17 }
   0x5   : > { %p858_p6 = scmp.ne.s32.totalorder %s1060_s1, %s857_s21  ;;  %p864_p10 = scmp.lt.u32.totalorder %s857_s21, %s1060_s1 }
   0x6   : > { %s1072_s15 = scalar_select %p966_p2, 1, 0 }
   0x7   : > { %p829_p4 = pneg %p966_p2 }
   0x9   : > { %p975_p5 = pnand %p1070_p3, %p829_p4 }
   0xb   : > { %p859_p7 = pneg %p975_p5 }
   0xd   : > { %p860_p8 = pnand %p859_p7, %p858_p6 }
   0xf   : > { %p861_p9 = pneg %p860_p8 }
  0x11   : > { %p866_p11 = pnand %p864_p10, %p861_p9 }
  0x13   : > { %869 = shalt.err (!%p866_p11)
}
  0x14   : > { %s870_s26 = scalar_lea.vmem %s287_s17, 32  ;;  %p878_p1 = scmp.lt.s32.totalorder %s287_s17, %s287_s17 }
  0x15   : > { %p871_p12 = scmp.ne.s32.totalorder %s287_s17, %s870_s26  ;;  %p879_p4 = scmp.lt.s32.totalorder %s870_s26, %s870_s26 }
  0x17   : > { %p873_p13 = pnand %p871_p12, %p859_p7  ;;  %p880_p3 = por %p879_p4, %p878_p1 }
  0x19   : > { %p874_p0 = pneg %p873_p13 }
  0x1b   : > { %p881_p2 = pnand %p880_p3, %p874_p0 }
  0x1d   : > { %884 = shalt.err (!%p881_p2)
}
  0x1e   : > { %832 = dma.hbm_to_vmem [thread:$0]  (!%p975_p5), %s1060_s1, 32, %s287_s17, [#allocation3]  }
  0x1f   : > { %p1074_p6 = scmp.ne.s32.totalorder %s1072_s15, 0 }
  0x20   : > { %p1075_p8 = scmp.eq.s32.totalorder (!%p1074_p6), %s962_s14, 0 }
  0x21   : > { %327 = sbr.rel (%p1074_p6) target bundleno = 1063 (0x427), region = 56 }
  0x28   : > { %890 = dma.done.wait (%p1075_p8), [#allocation3], 32   ;;  %p1076_p7 = pmov %p1075_p8 }
  0x29   : > { %p367_p9 = scmp.lt.s32.totalorder %s962_s14, 1  ;;  %v898_v0 = vmov 0.0   ;;  %vm899_vm0 = vmmov 0   ;;  %vm393_vm1 = vcmask 1041408   ;;  %v381_v1 = vld [vmem:[#allocation2] sm:$0x3] }
  0x2a   : > { %892 = vsyncadd (%p1076_p7), [#allocation3], 4294967264  ;;  %795 = vmatprep.subr.bf16.mxu0 %v898_v0  ;;  %797 = vmatprep.mubr.msk.bf16.mxu0 %vm899_vm0, %v898_v0  ;;  %v395_v3 = vsel %vm393_vm1, %v381_v1, 0  ;;  %vm389_vm2 = vcmask 31744   ;;  %v847_v4 = vld [vmem:[%s1062_s3] sm:$0xff]   ;;  %v848_v5 = vld [vmem:[%s1062_s3 + $0x8] sm:$0xff]  }
  0x2b   : > { %s1078_s14 = smov (!%p367_p9, %s962_s14), 1  ;;  %801 = vmatprep.subr.bf16.mxu1 %v898_v0  ;;  %805 = vmatprep.mubr.msk.bf16.mxu1 %vm899_vm0, %v898_v0  ;;  %v849_v6 = vld [vmem:[%s1064_s5] sm:$0xff]   ;;  %vm462_vm3 = vcmask 261120   ;;  %v850_v15 = vld [vmem:[%s1064_s5 + $0x8] sm:$0xff]  }
  0x2c   : > { %s765_s29 = sshll.u32 %s1078_s14, 2  ;;  %796 = vmatpush3.bf16.msra.mxu0 %v395_v3  ;;  %802 = vmatpush3.bf16.msra.mxu1 %v847_v4  ;;  %v768_v7 = vld [vmem:[%s1061_s2] ss:$0 sm:$0xff]  ;;  %v852_v25 = vld [vmem:[%s1066_s7 + $0x8] sm:$0xff]   ;;  %s766_s15 = sshll.u32 %s1078_s14, 3 }
  0x2d   : > { %s370_s12 = scalar_lea.vmem %s1059_s0, %s765_s29  ;;  %809 = vmatprep.subr.bf16.mxu0 %v898_v0  ;;  %803 = vmatprep.subr.bf16.mxu1 %v898_v0  ;;  %v851_v16 = vld [vmem:[%s1066_s7] sm:$0xff]   ;;  %s374_s20 = scalar_lea.vmem %s1068_s9, %s766_s15 }
  0x2e   : > { %v380_v2 = vld [vmem:[%s370_s12] sm:$0xf]  ;;  %s900_s14 = smov 124   ;;  %s378_s23 = scalar_lea.vmem %s1069_s10, %s766_s15 }
  0x2f   : > { %798 = vmatmul.mubr.msk.bf16.vlgmr.msra.gmra.mrb[0].mxu0 %vm389_vm2, %v380_v2  ;;  %v770_v17 = vld [vmem:[%s1063_s4] ss:$0 sm:$0xff] }
  0x30   : > { %813 = vmatprep.mubr.msk.bf16.mxu0 %vm899_vm0, %v898_v0  ;;  %804 = vmatpush3.bf16.msra.mxu1 %v848_v5  ;;  %v774_v26 = vld [vmem:[%s1065_s6] ss:$0 sm:$0xff] }
  0x31   : > { %817 = vmatprep.subr.bf16.mxu1 %v898_v0  ;;  %810 = vmatpush3.bf16.msra.mxu0 %v849_v6  ;;  %v778_v34 = vld [vmem:[%s1067_s8] ss:$0 sm:$0xff] }
  0x32   : > { %811 = vmatprep.subr.bf16.mxu0 %v898_v0 }
  0x35   : > { %812 = vmatpush3.bf16.msra.mxu0 %v850_v15 }
 0x102   : > { %v431_v8 = vpop.f32.mrb[0].mxu0 }
 0x103   : > { %v432_v9 = vadd.f32 %v768_v7, %v431_v8  ;;  %v799_v10 = vpop.f32.mrb[1].mxu0 }
 0x104   : > { %v434_v11 = vpop.f32.mrb[2].mxu0 }
 0x105   : > { %v437_v12 = vmax.f32 %v432_v9, 0.0  ;;  %v800_v13 = vpop.f32.mrb[3].mxu0 }
 0x107   : > { %v438_v14 = vpack.c.bf16 %v437_v12, %v437_v12 }
 0x109   : > { %806 = vmatmul.mubr.msk.bf16.vlgmr.msra.gmra.mrb[0].mxu1 %vm462_vm3, %v438_v14 }
 0x10a   : > { %821 = vmatprep.mubr.msk.bf16.mxu1 %vm899_vm0, %v898_v0  ;;  %818 = vmatpush3.bf16.msra.mxu1 %v851_v16 }
 0x10b   : > { %819 = vmatprep.subr.bf16.mxu1 %v898_v0 }
 0x10e   : > { %820 = vmatpush3.bf16.msra.mxu1 %v852_v25 }
 0x1dc   : > { %v500_v18 = vpop.f32.mrb[0].mxu1 }
 0x1dd   : > { %v501_v19 = vadd.f32 %v770_v17, %v500_v18  ;;  %v807_v20 = vpop.f32.mrb[1].mxu1 }
 0x1de   : > { %v503_v21 = vpop.f32.mrb[2].mxu1 }
 0x1df   : > { %v506_v22 = vmax.f32 %v501_v19, 0.0  ;;  %v808_v23 = vpop.f32.mrb[3].mxu1 }
 0x1e1   : > { %v507_v24 = vpack.c.bf16 %v506_v22, %v506_v22 }
 0x1e3   : > { %814 = vmatmul.mubr.msk.bf16.vlgmr.msra.gmra.mrb[4].mxu0 %vm462_vm3, %v507_v24 }
 0x2b6   : > { %v568_v27 = vpop.f32.mrb[4].mxu0 }
 0x2b7   : > { %v569_v28 = vadd.f32 %v774_v26, %v568_v27  ;;  %v815_v29 = vpop.f32.mrb[5].mxu0 }
 0x2b8   : > { %v571_v30 = vpop.f32.mrb[6].mxu0 }
 0x2b9   : > { %v574_v31 = vmax.f32 %v569_v28, 0.0  ;;  %v816_v32 = vpop.f32.mrb[7].mxu0 }
 0x2bb   : > { %v575_v33 = vpack.c.bf16 %v574_v31, %v574_v31 }
 0x2bd   : > { %822 = vmatmul.mubr.msk.bf16.vlgmr.msra.gmra.mrb[4].mxu1 %vm462_vm3, %v575_v33 }
 0x390   : > { %v636_v35 = vpop.f32.mrb[4].mxu1 }
 0x391   : > { %v637_v36 = vadd.f32 %v778_v34, %v636_v35  ;;  %v823_v37 = vpop.f32.mrb[5].mxu1 }
 0x392   : > { %v639_v38 = vpop.f32.mrb[6].mxu1 }
 0x393   : > { %642 = vst.msk [vmem:[%s374_s20] sm:$0xff] %vm389_vm2, %v637_v36  ;;  %v644_v39 = vmin.f32 %v637_v36, 20.0  ;;  %v824_v40 = vpop.f32.mrb[7].mxu1  ;;  %vm643_vm5 = vcmp.gt.f32.partialorder %v637_v36, 20.0 }
 0x395   : > { %v645_v41 = vmul.f32 1.442695, %v644_v39 }
 0x397   : > { %853 = vpow2.f32 %v645_v41 }
 0x3a1   : > { %v854_v42 = vpop.eup %853 }
 0x3a2   : > { %v647_v43 = vadd.f32 1.0, %v854_v42  ;;  %v650_v44 = vmul.f32 -0.5, %v854_v42  ;;  %v653_v46 = vand.u32 2147483647, %v854_v42 }
 0x3a4   : > { %855 = vlog2.f32 %v647_v43  ;;  %v651_v45 = vadd.f32 1.0, %v650_v44  ;;  %vm654_vm4 = vcmp.lt.f32.partialorder %v653_v46, 0.0004427343 }
 0x3a6   : > { %v652_v49 = vmul.f32 %v854_v42, %v651_v45 }
 0x3ae   : > { %v856_v47 = vpop.eup %855 }
 0x3af   : > { %v649_v48 = vmul.f32 0.6931472, %v856_v47 }
 0x3b1   : > { %v655_v50 = vsel %vm654_vm4, %v652_v49, %v649_v48 }
 0x3b2   : > { %v656_v51 = vsel %vm643_vm5, %v637_v36, %v655_v50 }
 0x3b3   : > { %658 = vrot.lane.b32.xlu0 %v656_v51, %s900_s14 }
 0x425   : > { %v659_v52 = vpop.permute.xlu0 %658 }
 0x426   : > { %661 = vst.msk [vmem:[%s378_s23] sm:$0xff] %vm389_vm2, %v659_v52 }
 0x427 PF: > { %s22_s13 = sadd.s32 1, %s895_s13  }
 0x428   : > { %p19_p2 = scmp.ge.s32.totalorder %s22_s13, 4  }
 0x42a   :  { %21 = sbr.rel (!%p19_p2) target bundleno = 1 (0x1), region = 103 }
 0x431   :  { %695 = vsyncpa [#allocation3], 1 }
 0x432   :  { %697 = vsyncpa [#allocation3 + $0x1], 1 }

</bundles_post_ra>
